<compile_context>
chip_gen: v6e
topology: v6e:2x2x1
jax: 0.10.0
libtpu: 0.0.40
codegen_flags: <defaults>
</compile_context>

<pallas_src>
import jax
import jax.numpy as jnp
import numpy as np
from jax.experimental import pallas as pl
from jax.experimental.pallas import tpu as pltpu

# ---- model dims (from MatNet.__init__) ----
D_IN, D_H1, D_H2, D_H3, D_OUT = 41, 200, 50, 20, 5
# ---- padded dims ----
D_IN_PAD = 48            # 41 -> 48 (96 B/row in bf16); padded cols are zeros
P_H1, P_H2, P_H3 = 256, 128, 128

MAX_TILE_B = 2048        # batch rows per grid step (multiple of 8)
VMEM_LIMIT_BYTES = 32 * 1024 * 1024


def _round_up(n, m):
    return ((n + m - 1) // m) * m


def _choose_tiling(B, max_tile_b=MAX_TILE_B):
    """Balanced batch tiles (<=7 padded rows per tile) with an even grid length
    whenever possible so v7x can shard the 'parallel' axis across its 2 TCs."""
    n = pl.cdiv(B, max_tile_b)
    if B >= 16:                      # enough rows for two >=8-row tiles
        n = max(n, 2)
        if n % 2:
            n += 1
    tb = _round_up(pl.cdiv(B, n), 8)
    return tb, n, tb * n


def matnet_kernel(x_ref,
                  w1_ref, b1_ref,
                  w2_ref, b2_ref,
                  w3_ref, b3_ref,
                  w4_ref, b4_ref,
                  out_ref):
    # x is already bf16 (cast + padded 41->48 in the wrapper); weights are bf16,
    # all matmuls accumulate in f32; bias / ReLU / softmax stay in f32
    # (v5e VPU/EUP have no bf16 path).

    # fc1 + relu
    h = jnp.dot(x_ref[...], w1_ref[...],
                preferred_element_type=jnp.float32) + b1_ref[...]
    h = jnp.maximum(h, 0.0)

    # fc5 + relu
    h = jnp.dot(h.astype(jnp.bfloat16), w2_ref[...],
                preferred_element_type=jnp.float32) + b2_ref[...]
    h = jnp.maximum(h, 0.0)

    # fc6 + relu
    h = jnp.dot(h.astype(jnp.bfloat16), w3_ref[...],
                preferred_element_type=jnp.float32) + b3_ref[...]
    h = jnp.maximum(h, 0.0)

    # fc7 (output kept narrow at 5 lanes; no padded logits -> softmax is exact)
    logits = jnp.dot(h.astype(jnp.bfloat16), w4_ref[...],
                     preferred_element_type=jnp.float32) + b4_ref[...]

    # softmax over dim=1 (feature axis), exact divide so rows sum to 1
    m = jnp.max(logits, axis=1, keepdims=True)
    e = jnp.exp(logits - m)
    s = jnp.sum(e, axis=1, keepdims=True)
    out_ref[...] = e / s


def matnet_forward(x, packed_params, max_tile_b=MAX_TILE_B):
    """x: (B, 41) f32. packed_params: lane-padded, bf16 weights / f32 biases."""
    (w1, b1, w2, b2, w3, b3, w4, b4) = packed_params
    B, d_in = x.shape
    assert d_in == D_IN

    tb, n_steps, b_pad = _choose_tiling(B, max_tile_b)

    # Pad rows to the tiled batch and columns 41 -> 48, cast to bf16.
    # Under jit this pad+convert fuses with the producer; it halves the dominant
    # HBM read stream and removes the in-kernel cast.
    x = jnp.pad(x, ((0, b_pad - B), (0, D_IN_PAD - D_IN))).astype(jnp.bfloat16)

    # weights / biases: full-array blocks, constant index -> fetched once and
    # resident in VMEM across all grid steps.
    def const(a):
        zeros = (0,) * a.ndim
        return pl.BlockSpec(a.shape, lambda i, _z=zeros: _z)

    out = pl.pallas_call(
        matnet_kernel,
        out_shape=jax.ShapeDtypeStruct((b_pad, D_OUT), jnp.float32),
        grid=(n_steps,),
        in_specs=[pl.BlockSpec((tb, D_IN_PAD), lambda i: (i, 0)),
                  const(w1), const(b1),
                  const(w2), const(b2),
                  const(w3), const(b3),
                  const(w4), const(b4)],
        out_specs=pl.BlockSpec((tb, D_OUT), lambda i: (i, 0)),
        compiler_params=pltpu.CompilerParams(
            dimension_semantics=("parallel",),
            vmem_limit_bytes=VMEM_LIMIT_BYTES),
    )(x, w1, b1, w2, b2, w3, b3, w4, b4)

    return out[:B] if b_pad != B else out


# ------------------------- parameters -------------------------

def init_params(key):
    """Deterministic init mimicking nn.Linear default (uniform +/- 1/sqrt(fan_in)).
    Returns UNPADDED f32 params, weights stored as (in_dim, out_dim)."""
    dims = [(D_IN, D_H1), (D_H1, D_H2), (D_H2, D_H3), (D_H3, D_OUT)]
    params = []
    for (fan_in, fan_out) in dims:
        key, kw, kb = jax.random.split(key, 3)
        bound = 1.0 / np.sqrt(fan_in)
        w = jax.random.uniform(kw, (fan_in, fan_out), jnp.float32, -bound, bound)
        b = jax.random.uniform(kb, (1, fan_out), jnp.float32, -bound, bound)
        params += [w, b]
    return tuple(params)


def pack_params(params):
    """Zero-pad in/hidden dims to lane-friendly sizes and cast weights to bf16.
    Padded channels produce exactly 0 through bias+ReLU, so the math is unchanged."""
    (w1, b1, w2, b2, w3, b3, w4, b4) = params

    def pad2(a, rows, cols):
        return jnp.pad(a, ((0, rows - a.shape[0]), (0, cols - a.shape[1])))

    w1p = pad2(w1, D_IN_PAD, P_H1).astype(jnp.bfloat16)  # (48, 256)
    b1p = pad2(b1, 1, P_H1)                              # (1, 256) f32
    w2p = pad2(w2, P_H1, P_H2).astype(jnp.bfloat16)      # (256, 128)
    b2p = pad2(b2, 1, P_H2)                              # (1, 128)
    w3p = pad2(w3, P_H2, P_H3).astype(jnp.bfloat16)      # (128, 128)
    b3p = pad2(b3, 1, P_H3)                              # (1, 128)
    w4p = pad2(w4, P_H3, D_OUT).astype(jnp.bfloat16)     # (128, 5) -- output stays narrow
    b4p = b4                                             # (1, 5)
    return (w1p, b1p, w2p, b2p, w3p, b3p, w4p, b4p)


def reference_forward(x, params):
    """Pure-JAX f32 reference on the UNPADDED params (PyTorch semantics)."""
    (w1, b1, w2, b2, w3, b3, w4, b4) = params
    h = jnp.maximum(x @ w1 + b1, 0.0)
    h = jnp.maximum(h @ w2 + b2, 0.0)
    h = jnp.maximum(h @ w3 + b3, 0.0)
    logits = h @ w4 + b4
    return jax.nn.softmax(logits, axis=1)


if __name__ == "__main__":
    key = jax.random.PRNGKey(0)
    key, kx1, kx2, kx3 = jax.random.split(key, 4)

    params = init_params(key)
    packed = pack_params(params)

    fwd = jax.jit(lambda xx: matnet_forward(xx, packed))

    # bf16 input + bf16 weights -> loosened tolerance vs the f32 reference
    RTOL, ATOL = 2e-2, 2e-2

    # small tile-aligned batch (single grid step)
    B1 = 8
    x1 = jax.random.normal(kx1, (B1, D_IN), jnp.float32)
    out1 = jax.block_until_ready(fwd(x1))
    np.testing.assert_allclose(np.asarray(out1), np.asarray(reference_forward(x1, params)),
                               rtol=RTOL, atol=ATOL)

    # small ragged batch (pad-to-tile + slice path)
    B2 = 13
    x2 = jax.random.normal(kx2, (B2, D_IN), jnp.float32)
    out2 = jax.block_until_ready(fwd(x2))
    np.testing.assert_allclose(np.asarray(out2), np.asarray(reference_forward(x2, params)),
                               rtol=RTOL, atol=ATOL)

    # larger ragged batch: exercises balanced tiling + even (2-step) parallel grid
    B3 = 600
    x3 = jax.random.normal(kx3, (B3, D_IN), jnp.float32)
    out3 = jax.block_until_ready(fwd(x3))
    np.testing.assert_allclose(np.asarray(out3), np.asarray(reference_forward(x3, params)),
                               rtol=RTOL, atol=ATOL)

    print("KERNEL_OK")
</pallas_src>

<mosaic_0001>
module attributes {stable_mosaic.version = 11 : i64} {
  func.func @matnet_kernel(%arg0: i32, %arg1: memref<8x48xbf16, #tpu.memory_space<vmem>>, %arg2: memref<48x256xbf16, #tpu.memory_space<vmem>>, %arg3: memref<1x256xf32, #tpu.memory_space<vmem>>, %arg4: memref<256x128xbf16, #tpu.memory_space<vmem>>, %arg5: memref<1x128xf32, #tpu.memory_space<vmem>>, %arg6: memref<128x128xbf16, #tpu.memory_space<vmem>>, %arg7: memref<1x128xf32, #tpu.memory_space<vmem>>, %arg8: memref<128x5xbf16, #tpu.memory_space<vmem>>, %arg9: memref<1x5xf32, #tpu.memory_space<vmem>>, %arg10: memref<8x5xf32, #tpu.memory_space<vmem>>) attributes {dimension_semantics = [#tpu.dimension_semantics<parallel>], iteration_bounds = array<i64: 1>, scalar_prefetch = 0 : i64, scratch_operands = 0 : i64, tpu.core_type = #tpu.core_type<tc>, window_params = [{transform_indices = @transform_0, window_bounds = array<i64: 8, 48>}, {pipeline_mode = #tpu.pipeline_mode<synchronous>, transform_indices = @transform_1, window_bounds = array<i64: 48, 256>}, {pipeline_mode = #tpu.pipeline_mode<synchronous>, transform_indices = @transform_2, window_bounds = array<i64: 1, 256>}, {pipeline_mode = #tpu.pipeline_mode<synchronous>, transform_indices = @transform_3, window_bounds = array<i64: 256, 128>}, {pipeline_mode = #tpu.pipeline_mode<synchronous>, transform_indices = @transform_4, window_bounds = array<i64: 1, 128>}, {pipeline_mode = #tpu.pipeline_mode<synchronous>, transform_indices = @transform_5, window_bounds = array<i64: 128, 128>}, {pipeline_mode = #tpu.pipeline_mode<synchronous>, transform_indices = @transform_6, window_bounds = array<i64: 1, 128>}, {pipeline_mode = #tpu.pipeline_mode<synchronous>, transform_indices = @transform_7, window_bounds = array<i64: 128, 5>}, {pipeline_mode = #tpu.pipeline_mode<synchronous>, transform_indices = @transform_8, window_bounds = array<i64: 1, 5>}, {transform_indices = @transform_9, window_bounds = array<i64: 8, 5>}]} {
    %c0 = arith.constant 0 : index
    %c0_0 = arith.constant 0 : index
    %0 = vector.load %arg1[%c0, %c0_0] : memref<8x48xbf16, #tpu.memory_space<vmem>>, vector<8x48xbf16>
    %c0_1 = arith.constant 0 : index
    %c0_2 = arith.constant 0 : index
    %1 = vector.load %arg2[%c0_1, %c0_2] : memref<48x256xbf16, #tpu.memory_space<vmem>>, vector<48x256xbf16>
    %cst = arith.constant dense<0.000000e+00> : vector<8x256xf32>
    %2 = tpu.matmul %0, %1, %cst {dimension_numbers = #tpu.dot_dimension_numbers<[1], [0], [0], [1], [0, 0, 1, 1], [], []>} : vector<8x48xbf16>, vector<48x256xbf16>, vector<8x256xf32> -> vector<8x256xf32>
    %c0_3 = arith.constant 0 : index
    %c0_4 = arith.constant 0 : index
    %3 = vector.load %arg3[%c0_3, %c0_4] : memref<1x256xf32, #tpu.memory_space<vmem>>, vector<1x256xf32>
    %4 = vector.broadcast %3 : vector<1x256xf32> to vector<8x256xf32>
    %5 = arith.addf %2, %4 : vector<8x256xf32>
    %cst_5 = arith.constant 0.000000e+00 : f32
    %6 = vector.broadcast %cst_5 : f32 to vector<8x256xf32>
    %7 = arith.maximumf %5, %6 : vector<8x256xf32>
    %8 = arith.truncf %7 : vector<8x256xf32> to vector<8x256xbf16>
    %c0_6 = arith.constant 0 : index
    %c0_7 = arith.constant 0 : index
    %9 = vector.load %arg4[%c0_6, %c0_7] : memref<256x128xbf16, #tpu.memory_space<vmem>>, vector<256x128xbf16>
    %cst_8 = arith.constant dense<0.000000e+00> : vector<8x128xf32>
    %10 = tpu.matmul %8, %9, %cst_8 {dimension_numbers = #tpu.dot_dimension_numbers<[1], [0], [0], [1], [0, 0, 1, 1], [], []>} : vector<8x256xbf16>, vector<256x128xbf16>, vector<8x128xf32> -> vector<8x128xf32>
    %c0_9 = arith.constant 0 : index
    %c0_10 = arith.constant 0 : index
    %11 = vector.load %arg5[%c0_9, %c0_10] : memref<1x128xf32, #tpu.memory_space<vmem>>, vector<1x128xf32>
    %12 = vector.broadcast %11 : vector<1x128xf32> to vector<8x128xf32>
    %13 = arith.addf %10, %12 : vector<8x128xf32>
    %cst_11 = arith.constant 0.000000e+00 : f32
    %14 = vector.broadcast %cst_11 : f32 to vector<8x128xf32>
    %15 = arith.maximumf %13, %14 : vector<8x128xf32>
    %16 = arith.truncf %15 : vector<8x128xf32> to vector<8x128xbf16>
    %c0_12 = arith.constant 0 : index
    %c0_13 = arith.constant 0 : index
    %17 = vector.load %arg6[%c0_12, %c0_13] : memref<128x128xbf16, #tpu.memory_space<vmem>>, vector<128x128xbf16>
    %cst_14 = arith.constant dense<0.000000e+00> : vector<8x128xf32>
    %18 = tpu.matmul %16, %17, %cst_14 {dimension_numbers = #tpu.dot_dimension_numbers<[1], [0], [0], [1], [0, 0, 1, 1], [], []>} : vector<8x128xbf16>, vector<128x128xbf16>, vector<8x128xf32> -> vector<8x128xf32>
    %c0_15 = arith.constant 0 : index
    %c0_16 = arith.constant 0 : index
    %19 = vector.load %arg7[%c0_15, %c0_16] : memref<1x128xf32, #tpu.memory_space<vmem>>, vector<1x128xf32>
    %20 = vector.broadcast %19 : vector<1x128xf32> to vector<8x128xf32>
    %21 = arith.addf %18, %20 : vector<8x128xf32>
    %cst_17 = arith.constant 0.000000e+00 : f32
    %22 = vector.broadcast %cst_17 : f32 to vector<8x128xf32>
    %23 = arith.maximumf %21, %22 : vector<8x128xf32>
    %24 = arith.truncf %23 : vector<8x128xf32> to vector<8x128xbf16>
    %c0_18 = arith.constant 0 : index
    %c0_19 = arith.constant 0 : index
    %25 = vector.load %arg8[%c0_18, %c0_19] : memref<128x5xbf16, #tpu.memory_space<vmem>>, vector<128x5xbf16>
    %cst_20 = arith.constant dense<0.000000e+00> : vector<8x5xf32>
    %26 = tpu.matmul %24, %25, %cst_20 {dimension_numbers = #tpu.dot_dimension_numbers<[1], [0], [0], [1], [0, 0, 1, 1], [], []>} : vector<8x128xbf16>, vector<128x5xbf16>, vector<8x5xf32> -> vector<8x5xf32>
    %c0_21 = arith.constant 0 : index
    %c0_22 = arith.constant 0 : index
    %27 = vector.load %arg9[%c0_21, %c0_22] : memref<1x5xf32, #tpu.memory_space<vmem>>, vector<1x5xf32>
    %28 = vector.broadcast %27 : vector<1x5xf32> to vector<8x5xf32>
    %29 = arith.addf %26, %28 : vector<8x5xf32>
    %cst_23 = arith.constant dense<0xFF800000> : vector<8xf32>
    %30 = vector.multi_reduction <maximumf>, %29, %cst_23 [1] : vector<8x5xf32> to vector<8xf32>
    %31 = vector.shape_cast %30 : vector<8xf32> to vector<8x1xf32>
    %32 = vector.broadcast %31 : vector<8x1xf32> to vector<8x5xf32>
    %33 = arith.subf %29, %32 : vector<8x5xf32>
    %34 = math.exp %33 : vector<8x5xf32>
    %cst_24 = arith.constant dense<0.000000e+00> : vector<8xf32>
    %35 = vector.multi_reduction <add>, %34, %cst_24 [1] : vector<8x5xf32> to vector<8xf32>
    %36 = vector.shape_cast %35 : vector<8xf32> to vector<8x1xf32>
    %37 = vector.broadcast %36 : vector<8x1xf32> to vector<8x5xf32>
    %38 = arith.divf %34, %37 : vector<8x5xf32>
    %c0_25 = arith.constant 0 : index
    %c0_26 = arith.constant 0 : index
    %39 = vector.load %arg10[%c0_25, %c0_26] : memref<8x5xf32, #tpu.memory_space<vmem>>, vector<8x5xf32>
    tpu.vector_store %arg10[%c0_25, %c0_26], %38 {strides = array<i32>} : memref<8x5xf32, #tpu.memory_space<vmem>>, vector<8x5xf32>,
    return
  }
  func.func @transform_0(%arg0: i32) -> (i32, i32) {
    %c0_i32 = arith.constant 0 : i32
    %c0_i32_0 = arith.constant 0 : i32
    return %arg0, %c0_i32 : i32, i32
  }
  func.func @transform_1(%arg0: i32) -> (i32, i32) {
    %c0_i32 = arith.constant 0 : i32
    %c0_i32_0 = arith.constant 0 : i32
    %c0_i32_1 = arith.constant 0 : i32
    return %c0_i32, %c0_i32_0 : i32, i32
  }
  func.func @transform_2(%arg0: i32) -> (i32, i32) {
    %c0_i32 = arith.constant 0 : i32
    %c0_i32_0 = arith.constant 0 : i32
    %c0_i32_1 = arith.constant 0 : i32
    return %c0_i32, %c0_i32_0 : i32, i32
  }
  func.func @transform_3(%arg0: i32) -> (i32, i32) {
    %c0_i32 = arith.constant 0 : i32
    %c0_i32_0 = arith.constant 0 : i32
    %c0_i32_1 = arith.constant 0 : i32
    return %c0_i32, %c0_i32_0 : i32, i32
  }
  func.func @transform_4(%arg0: i32) -> (i32, i32) {
    %c0_i32 = arith.constant 0 : i32
    %c0_i32_0 = arith.constant 0 : i32
    %c0_i32_1 = arith.constant 0 : i32
    return %c0_i32, %c0_i32_0 : i32, i32
  }
  func.func @transform_5(%arg0: i32) -> (i32, i32) {
    %c0_i32 = arith.constant 0 : i32
    %c0_i32_0 = arith.constant 0 : i32
    %c0_i32_1 = arith.constant 0 : i32
    return %c0_i32, %c0_i32_0 : i32, i32
  }
  func.func @transform_6(%arg0: i32) -> (i32, i32) {
    %c0_i32 = arith.constant 0 : i32
    %c0_i32_0 = arith.constant 0 : i32
    %c0_i32_1 = arith.constant 0 : i32
    return %c0_i32, %c0_i32_0 : i32, i32
  }
  func.func @transform_7(%arg0: i32) -> (i32, i32) {
    %c0_i32 = arith.constant 0 : i32
    %c0_i32_0 = arith.constant 0 : i32
    %c0_i32_1 = arith.constant 0 : i32
    return %c0_i32, %c0_i32_0 : i32, i32
  }
  func.func @transform_8(%arg0: i32) -> (i32, i32) {
    %c0_i32 = arith.constant 0 : i32
    %c0_i32_0 = arith.constant 0 : i32
    %c0_i32_1 = arith.constant 0 : i32
    return %c0_i32, %c0_i32_0 : i32, i32
  }
  func.func @transform_9(%arg0: i32) -> (i32, i32) {
    %c0_i32 = arith.constant 0 : i32
    %c0_i32_0 = arith.constant 0 : i32
    return %arg0, %c0_i32 : i32, i32
  }
}

</mosaic_0001>

<bundles_post_ra>
// kernel: _lambda_.1
= control target key start
LH: loop header
LB: loop body
LE: loop exit
PB: predicated region body
PF: predicated region fallthrough
CT: control target
= control target key end

     0   :  { %14 = vsyncpa [#allocation3], 0  ;;  %s1027_s0 = inlined_call_operand.vmem [shape: bf16[8,48], index: 0, kind: input, shape index: {}]   ;;  %s1028_s1 = inlined_call_operand.hbm [shape: bf16[48,256], index: 1, kind: input, shape index: {}]   ;;  %s1029_s2 = inlined_call_operand.vmem [shape: f32[1,256], index: 2, kind: input, shape index: {}]   ;;  %s1030_s3 = inlined_call_operand.hbm [shape: bf16[256,128], index: 3, kind: input, shape index: {}]   ;;  %s1031_s4 = inlined_call_operand.vmem [shape: f32[1,128], index: 4, kind: input, shape index: {}]   ;;  %s1032_s5 = inlined_call_operand.hbm [shape: bf16[128,128], index: 5, kind: input, shape index: {}]   ;;  %s1033_s6 = inlined_call_operand.vmem [shape: f32[1,128], index: 6, kind: input, shape index: {}]   ;;  %s1034_s7 = inlined_call_operand.hbm [shape: bf16[128,5], index: 7, kind: input, shape index: {}]   ;;  %s1035_s8 = inlined_call_operand.vmem [shape: f32[1,5], index: 8, kind: input, shape index: {}]   ;;  %s1036_s9 = inlined_call_operand.hbm [shape: f32[8,5], index: 9, kind: output, shape index: {}]  }
   0x1   :  { %15 = vsyncpa [#allocation6], 0 }
   0x2   :  { %16 = vsyncpa [#allocation9], 0 }
   0x3   :  { %17 = vsyncpa [#allocation4], 0  ;;  %s905_s30 = smov [#allocation5]  }
   0x4   :  { %s39_s10 = sshll.u32 %s905_s30, 4  ;;  %s40_s10 = int_to_ptr.vmem [resolvable:$true] %s39_s10 }
   0x5   :  { %s805_s11 = scalar_lea.vmem %s40_s10, 2048  ;;  %p810_p1 = scmp.lt.s32.totalorder %s40_s10, %s40_s10 }
   0x6   :  { %p806_p0 = scmp.ne.s32.totalorder %s40_s10, %s805_s11  ;;  %p811_p2 = scmp.lt.s32.totalorder %s805_s11, %s805_s11 }
   0x8   :  { %p812_p3 = por %p811_p2, %p810_p1 }
   0xa   :  { %p813_p4 = pnand %p812_p3, %p806_p0 }
   0xc   :  { %816 = shalt.err (!%p813_p4)
}
   0xd   :  { %s906_s12 = smov 64   ;;  %s907_s13 = smov 4  }
   0xe   :  { %45 = dma.hbm_to_vmem [thread:$0]  %s1030_s3, 2048, %s40_s10, [#allocation6], %s906_s12, %s906_s12, %s907_s13  }
   0xf   :  { %s908_s16 = smov [#allocation2]  }
  0x10   :  { %s25_s17 = sshll.u32 %s908_s16, 4  ;;  %s26_s17 = int_to_ptr.vmem [resolvable:$true] %s25_s17 }
  0x11   :  { %s825_s18 = scalar_lea.vmem %s26_s17, 768  ;;  %p830_p6 = scmp.lt.s32.totalorder %s26_s17, %s26_s17 }
  0x12   :  { %p826_p5 = scmp.ne.s32.totalorder %s26_s17, %s825_s18  ;;  %p831_p7 = scmp.lt.s32.totalorder %s825_s18, %s825_s18 }
  0x14   :  { %p832_p8 = por %p831_p7, %p830_p6 }
  0x16   :  { %p833_p9 = pnand %p832_p8, %p826_p5 }
  0x18   :  { %836 = shalt.err (!%p833_p9)
}
  0x19   :  { %s909_s19 = smov 128   ;;  %s910_s20 = smov 8  }
  0x1a   :  { %31 = dma.hbm_to_vmem [thread:$0]  %s1028_s1, 768, %s26_s17, [#allocation3], %s909_s19, %s909_s19, %s910_s20  }
  0x1b   :  { %s911_s23 = smov [#allocation7]   ;;  %s912_s25 = smov [#allocation8]  }
  0x1c   :  { %s53_s24 = sshll.u32 %s911_s23, 4  ;;  %s67_s3 = sshll.u32 %s912_s25, 4  ;;  %s54_s24 = int_to_ptr.vmem [resolvable:$true] %s53_s24  ;;  %s68_s3 = int_to_ptr.vmem [resolvable:$true] %s67_s3 }
  0x1d   :  { %s845_s26 = scalar_lea.vmem %s54_s24, 1024  ;;  %p850_p11 = scmp.lt.s32.totalorder %s54_s24, %s54_s24 }
  0x1e   :  { %p846_p10 = scmp.ne.s32.totalorder %s54_s24, %s845_s26  ;;  %p851_p12 = scmp.lt.s32.totalorder %s845_s26, %s845_s26 }
  0x20   :  { %p852_p13 = por %p851_p12, %p850_p11 }
  0x22   :  { %p853_p0 = pnand %p852_p13, %p846_p10 }
  0x24   :  { %856 = shalt.err (!%p853_p0)
}
  0x25   :  { %59 = dma.hbm_to_vmem [thread:$0]  %s1032_s5, 1024, %s54_s24, [#allocation6], %s906_s12, %s906_s12, %s907_s13  }
  0x26   :  { %s865_s1 = scalar_lea.vmem %s68_s3, 1024  ;;  %p870_p2 = scmp.lt.s32.totalorder %s68_s3, %s68_s3 }
  0x27   :  { %p866_p1 = scmp.ne.s32.totalorder %s68_s3, %s865_s1  ;;  %p871_p3 = scmp.lt.s32.totalorder %s865_s1, %s865_s1 }
  0x29   :  { %p872_p4 = por %p871_p3, %p870_p2 }
  0x2b   :  { %p873_p5 = pnand %p872_p4, %p866_p1 }
  0x2d   :  { %876 = shalt.err (!%p873_p5)
}
  0x2e   :  { %73 = dma.hbm_to_vmem [thread:$0]  %s1034_s7, 1024, %s68_s3, [#allocation9], %s906_s12, %s906_s12, %s907_s13  }
  0x2f   :  { %897 = dma.done.wait [#allocation3], 768  }
  0x30   :  { %898 = vsyncadd [#allocation3], 4294966528 }
  0x31   :  { %899 = dma.done.wait [#allocation6], 3072  }
  0x32   :  { %900 = vsyncadd [#allocation6], 4294964224 }
  0x33   :  { %901 = dma.done.wait [#allocation9], 1024  }
  0x34   :  { %902 = vsyncadd [#allocation9], 4294966272  ;;  %v913_v0 = vmov 0   ;;  %v752_v1 = vld [vmem:[#allocation2 + $0x24] ss:$8 sps:$4 sm:$0xff]   ;;  %v765_v11 = vld [vmem:[#allocation5 + $0x68] sm:$0xff]   ;;  %v98_v30 = vlaneseq }
  0x35   :  { %174 = vmatprep.mubr.bf16.mxu0 %v913_v0  ;;  %v754_v2 = vld [vmem:[#allocation2 + $0x20] ss:$8 sps:$4 sm:$0xff]   ;;  %152 = vmatprep.subr.bf16.mxu0 %v752_v1  ;;  %v755_v3 = vld [vmem:[#allocation2 + $0x14] ss:$8 sps:$4 sm:$0xff]   ;;  %v757_v4 = vld [vmem:[#allocation2 + $0x10] ss:$8 sps:$4 sm:$0xff]  }
  0x36   :  { %153 = vmatpush1.bf16.msra.mxu0 %v754_v2  ;;  %v758_v5 = vld [vmem:[#allocation2 + $0x4] ss:$8 sps:$4 sm:$0xff]   ;;  %v760_v6 = vld [vmem:[#allocation2] ss:$8 sps:$4 sm:$0xff]   ;;  %vm138_vm0 = vcmask 392192   ;;  %v766_v13 = vld [vmem:[#allocation5 + $0x28] sm:$0xff]  }
  0x37   :  { %154 = vmatprep.subr.bf16.mxu0 %v755_v3  ;;  %v761_v7 = vld [vmem:[#allocation5 + $0x78] sm:$0xff]   ;;  %v763_v9 = vld [vmem:[#allocation5 + $0x70] sm:$0xff]   ;;  %v767_v14 = vld [vmem:[#allocation5 + $0x60] sm:$0xff]   ;;  %v914_v25 = vmov 0.0   ;;  %v99_v31 = vshrl.u32 %v98_v30, 7  ;;  %vm915_vm1 = vmmov 0  }
  0x38   :  { %v762_v8 = vld [vmem:[#allocation5 + $0x38] sm:$0xff]   ;;  %660 = vmatprep.subr.bf16.mxu1 %v761_v7  ;;  %v764_v10 = vld [vmem:[#allocation5 + $0x30] sm:$0xff]   ;;  %v768_v15 = vld [vmem:[#allocation5 + $0x20] sm:$0xff]   ;;  %vm588_vm2 = vcmask 39936  }
  0x39   :  { %661 = vmatpush3.bf16.msra.mxu1 %v762_v8  ;;  %v89_v12 = vld [vmem:[%s1027_s0] sm:$0xf]  ;;  %v769_v16 = vld [vmem:[#allocation5 + $0x58] sm:$0xff]   ;;  %v773_v20 = vld [vmem:[#allocation5 + $0x48] sm:$0xff]   ;;  %v100_v32 = vsub.s32 0, %v99_v31  ;;  %v104_v34 = vsub.s32 1, %v99_v31 }
  0x3a   :  { %155 = vmatpush1.bf16.msra.mxu0 %v757_v4  ;;  %662 = vmatprep.subr.bf16.mxu1 %v763_v9  ;;  %v770_v17 = vld [vmem:[#allocation5 + $0x18] sm:$0xff]   ;;  %v771_v18 = vld [vmem:[#allocation5 + $0x50] sm:$0xff]   ;;  %v774_v21 = vld [vmem:[#allocation5 + $0x8] sm:$0xff]  }
  0x3b   :  { %156 = vmatprep.subr.bf16.mxu0 %v758_v5  ;;  %v772_v19 = vld [vmem:[#allocation5 + $0x10] sm:$0xff]   ;;  %v775_v22 = vld [vmem:[#allocation5 + $0x40] sm:$0xff]   ;;  %v777_v24 = vld [vmem:[#allocation7 + $0x38] sm:$0xff]  }
  0x3c   :  { %v776_v23 = vld [vmem:[#allocation5] sm:$0xff]   ;;  %v778_v26 = vld [vmem:[#allocation7 + $0x30] sm:$0xff]   ;;  %v779_v27 = vld [vmem:[#allocation7 + $0x28] sm:$0xff]  }
  0x3d   :  { %663 = vmatpush3.bf16.msra.mxu1 %v764_v10  ;;  %v780_v28 = vld [vmem:[#allocation7 + $0x20] sm:$0xff]   ;;  %v781_v29 = vld [vmem:[#allocation7 + $0x18] sm:$0xff]   ;;  %v96_v33 = vld [vmem:[%s1029_s2] sm:$0x3] }
  0x3e   :  { %157 = vmatpush1.bf16.msra.mxu0 %v760_v6  ;;  %664 = vmatprep.subr.bf16.mxu1 %v765_v11  ;;  %v101_v35 = vrot.slane %v96_v33, %v100_v32  ;;  %v105_v36 = vrot.slane %v96_v33, %v104_v34  ;;  %v782_v47 = vld [vmem:[#allocation7 + $0x10] sm:$0xff]   ;;  %v783_v48 = vld [vmem:[#allocation7 + $0x8] sm:$0xff]   ;;  %v784_v49 = vld [vmem:[#allocation7] sm:$0xff]  }
  0x3f   :  { %700 = vmatprep.subr.bf16.mxu0 %v914_v25  ;;  %v785_v50 = vld [vmem:[#allocation8 + $0x38] sm:$0xff]   ;;  %v786_v51 = vld [vmem:[#allocation8 + $0x30] sm:$0xff]   ;;  %v787_v52 = vld [vmem:[#allocation8 + $0x28] sm:$0xff]  }
  0x40   :  { %v788_v53 = vld [vmem:[#allocation8 + $0x20] sm:$0xff]   ;;  %v789_v54 = vld [vmem:[#allocation8 + $0x18] sm:$0xff]   ;;  %v790_v55 = vld [vmem:[#allocation8 + $0x10] sm:$0xff]  }
  0x41   :  { %624 = vmatmul.mubr.msk.bf16.vlgmr.msra.gmra.mxu0 %vm138_vm0, %v89_v12  ;;  %665 = vmatpush3.bf16.msra.mxu1 %v766_v13  ;;  %v625_v57 = vld [vmem:[%s1031_s4] ss:$0 sm:$0xff]  ;;  %v791_v1 = vld [vmem:[#allocation8 + $0x8] sm:$0xff]   ;;  %v792_v2 = vld [vmem:[#allocation8] sm:$0xff]  }
  0x42   :  { %666 = vmatprep.subr.bf16.mxu1 %v767_v14  ;;  %701 = vmatpush3.bf16.msra.mxu0 %v777_v24  ;;  %v642_v3 = vld [vmem:[%s1033_s6] ss:$0 sm:$0xff]  ;;  %s916_s6 = smov [#allocation10]  }
  0x43   :  { %702 = vmatprep.subr.bf16.mxu0 %v914_v25  ;;  %716 = vmatprep.mubr.msk.bf16.mxu0 %vm915_vm1, %v914_v25  ;;  %v651_v11 = vld [vmem:[%s1035_s8] ss:$0 sm:$0xff]  ;;  %s607_s8 = sshll.u32 %s916_s6, 4  ;;  %s608_s8 = int_to_ptr.vmem [resolvable:$true] %s607_s8 }
  0x44   :  { %s877_s15 = scalar_lea.vmem %s608_s8, 128  ;;  %p882_p7 = scmp.lt.s32.totalorder %s608_s8, %s608_s8 }
  0x45   :  { %667 = vmatpush3.bf16.msra.mxu1 %v768_v15  ;;  %p878_p6 = scmp.ne.s32.totalorder %s608_s8, %s877_s15  ;;  %p883_p8 = scmp.lt.s32.totalorder %s877_s15, %s877_s15 }
  0x46   :  { %668 = vmatprep.subr.bf16.mxu1 %v769_v16  ;;  %703 = vmatpush3.bf16.msra.mxu0 %v778_v26 }
  0x47   :  { %704 = vmatprep.subr.bf16.mxu0 %v914_v25  ;;  %p884_p9 = por %p883_p8, %p882_p7 }
  0x49   :  { %669 = vmatpush3.bf16.msra.mxu1 %v770_v17  ;;  %p885_p10 = pnand %p884_p9, %p878_p6 }
  0x4a   :  { %670 = vmatprep.subr.bf16.mxu1 %v771_v18  ;;  %705 = vmatpush3.bf16.msra.mxu0 %v779_v27 }
  0x4b   :  { %706 = vmatprep.subr.bf16.mxu0 %v914_v25 }
  0x4d   :  { %671 = vmatpush3.bf16.msra.mxu1 %v772_v19 }
  0x4e   :  { %672 = vmatprep.subr.bf16.mxu1 %v773_v20  ;;  %707 = vmatpush3.bf16.msra.mxu0 %v780_v28 }
  0x4f   :  { %708 = vmatprep.subr.bf16.mxu0 %v914_v25 }
  0x51   :  { %673 = vmatpush3.bf16.msra.mxu1 %v774_v21 }
  0x52   :  { %674 = vmatprep.subr.bf16.mxu1 %v775_v22  ;;  %709 = vmatpush3.bf16.msra.mxu0 %v781_v29 }
  0x53   :  { %710 = vmatprep.subr.bf16.mxu0 %v914_v25 }
  0x55   :  { %675 = vmatpush3.bf16.msra.mxu1 %v776_v23 }
  0x56   :  { %720 = vmatprep.subr.bf16.mxu1 %v914_v25  ;;  %711 = vmatpush3.bf16.msra.mxu0 %v782_v47 }
  0x57   :  { %712 = vmatprep.subr.bf16.mxu0 %v914_v25 }
  0x5a   :  { %713 = vmatpush3.bf16.msra.mxu0 %v783_v48 }
  0x5b   :  { %714 = vmatprep.subr.bf16.mxu0 %v914_v25 }
  0x5e   :  { %715 = vmatpush3.bf16.msra.mxu0 %v784_v49 }
 0x101   :  { %v176_v37 = vpop.f32.mrf.mxu0 }
 0x102   :  { %v177_v38 = vadd.f32 %v176_v37, %v101_v35 }
 0x103   :  { %v178_v39 = vpop.f32.mrf.mxu0 }
 0x104   :  { %v179_v40 = vadd.f32 %v178_v39, %v105_v36  ;;  %v183_v41 = vmax.f32 %v177_v38, 0.0 }
 0x105   :  { %v180_v42 = vpop.f32.mrf.mxu0 }
 0x106   :  { %v184_v43 = vmax.f32 %v179_v40, 0.0  ;;  %v185_v46 = vpack.c.bf16 %v183_v41, %v183_v41 }
 0x107   :  { %v181_v44 = vpop.f32.mrf.mxu0 }
 0x108   :  { %v186_v45 = vpack.c.bf16 %v184_v43, %v184_v43 }
 0x10a   :  { %354 = vmatprep.mubr.bf16.mxu1 %v186_v45 }
 0x10b   :  { %355 = vmatmul.mubr.bf16.vlgmr.msra.gmra.mxu1 %v185_v46 }
 0x10c   :  { %736 = vmatprep.mubr.msk.bf16.mxu1 %vm915_vm1, %v914_v25  ;;  %721 = vmatpush3.bf16.msra.mxu1 %v785_v50 }
 0x10d   :  { %722 = vmatprep.subr.bf16.mxu1 %v914_v25 }
 0x110   :  { %723 = vmatpush3.bf16.msra.mxu1 %v786_v51 }
 0x111   :  { %724 = vmatprep.subr.bf16.mxu1 %v914_v25 }
 0x114   :  { %725 = vmatpush3.bf16.msra.mxu1 %v787_v52 }
 0x115   :  { %726 = vmatprep.subr.bf16.mxu1 %v914_v25 }
 0x118   :  { %727 = vmatpush3.bf16.msra.mxu1 %v788_v53 }
 0x119   :  { %728 = vmatprep.subr.bf16.mxu1 %v914_v25 }
 0x11c   :  { %729 = vmatpush3.bf16.msra.mxu1 %v789_v54 }
 0x11d   :  { %730 = vmatprep.subr.bf16.mxu1 %v914_v25 }
 0x120   :  { %731 = vmatpush3.bf16.msra.mxu1 %v790_v55 }
 0x121   :  { %732 = vmatprep.subr.bf16.mxu1 %v914_v25 }
 0x124   :  { %733 = vmatpush3.bf16.msra.mxu1 %v791_v1 }
 0x125   :  { %734 = vmatprep.subr.bf16.mxu1 %v914_v25 }
 0x128   :  { %735 = vmatpush3.bf16.msra.mxu1 %v792_v2 }
 0x1cb   :  { %v676_v56 = vpop.f32.mrf.mxu1 }
 0x1cd   :  { %v677_v58 = vpop.f32.mrf.mxu1 }
 0x1ce   :  { %v678_v59 = vadd.f32 %v677_v58, %v676_v56 }
 0x1cf   :  { %v679_v60 = vpop.f32.mrf.mxu1 }
 0x1d0   :  { %v357_v61 = vadd.f32 %v678_v59, %v625_v57 }
 0x1d1   :  { %v680_v62 = vpop.f32.mrf.mxu1 }
 0x1d2   :  { %v362_v63 = vmax.f32 %v357_v61, 0.0 }
 0x1d4   :  { %v363_v0 = vpack.c.bf16 %v362_v63, %v362_v63 }
 0x1d6   :  { %717 = vmatmul.mubr.bf16.vlgmr.msra.gmra.mxu0 %v363_v0 }
 0x296   :  { %v469_v4 = vpop.f32.mrf.mxu0 }
 0x297   :  { %v470_v5 = vadd.f32 %v642_v3, %v469_v4 }
 0x298   :  { %v718_v6 = vpop.f32.mrf.mxu0 }
 0x299   :  { %v475_v7 = vmax.f32 %v470_v5, 0.0 }
 0x29a   :  { %v472_v8 = vpop.f32.mrf.mxu0 }
 0x29b   :  { %v476_v9 = vpack.c.bf16 %v475_v7, %v475_v7 }
 0x29c   :  { %v719_v10 = vpop.f32.mrf.mxu0 }
 0x29d   :  { %737 = vmatmul.mubr.bf16.vlgmr.msra.gmra.mxu1 %v476_v9 }
 0x35d   :  { %v582_v12 = vpop.f32.mrf.mxu1 }
 0x35e   :  { %v583_v13 = vadd.f32 %v651_v11, %v582_v12 }
 0x35f   :  { %v738_v14 = vpop.f32.mrf.mxu1 }
 0x360   :  { %v589_v15 = vsel %vm588_vm2, %v583_v13, -inf }
 0x361   :  { %590 = vmax.xlane.f32.xlu0 %v589_v15  ;;  %v585_v16 = vpop.f32.mrf.mxu1 }
 0x363   :  { %v739_v17 = vpop.f32.mrf.mxu1 }
 0x3ea   :  { %v591_v18 = vpop.xlane.xlu0 %590 }
 0x3eb   :  { %v592_v19 = vsub.f32 %v583_v13, %v591_v18 }
 0x3ed   :  { %v593_v20 = vmul.f32 1.442695, %v592_v19 }
 0x3ef   :  { %793 = vpow2.f32 %v593_v20 }
 0x3fc   :  { %v794_v21 = vpop.eup %793 }
 0x3fd   :  { %v595_v22 = vsel %vm588_vm2, %v794_v21, 0.0 }
 0x3fe   :  { %596 = vadd.xlane.f32.xlu0 %v595_v22 }
 0x487   :  { %v597_v23 = vpop.xlane.xlu0 %596 }
 0x488   :  { %795 = vrcp.f32 %v597_v23 }
 0x495   :  { %v796_v24 = vpop.eup %795 }
 0x496   :  { %v599_v25 = vmul.f32 %v796_v24, %v794_v21 }
 0x498   :  { %600 = vst.msk [vmem:[#allocation10] sm:$0xff] %vm588_vm2, %v599_v25 }
 0x499   :  { %888 = shalt.err (!%p885_p10)
}
 0x49a   :  { %610 = dma.vmem_to_hbm [thread:$0]  %s608_s8, 128, %s1036_s9, [#allocation4]  }
 0x49b   :  { %903 = dma.done.wait [#allocation4], 128  }
 0x49c   :  { %904 = vsyncadd [#allocation4], 4294967168 }
 0x49d   :  { %614 = vsyncpa [#allocation3], 1 }
 0x49e   :  { %615 = vsyncpa [#allocation6], 1 }
 0x49f   :  { %616 = vsyncpa [#allocation9], 1 }
 0x4a0   :  { %617 = vsyncpa [#allocation4], 1 }

</bundles_post_ra>
